<compile_context>
chip_gen: v7x
topology: tpu7x:2x2x1
jax: 0.10.0
libtpu: 0.0.40
codegen_flags: <defaults>
</compile_context>

<pallas_src>
import math

import jax
import jax.numpy as jnp
from jax.experimental import pallas as pl
from jax.experimental.pallas import tpu as pltpu

_MIB = 1 << 20
_LCM_CAP = 65536  # 8 packed rows of 65536 f32 lanes still fit a 2 MiB block.


def _affine_kernel(x_ref, alpha_ref, beta_ref, o_ref):
    # x_ref: (tile_rows, L); alpha_ref/beta_ref: (1, L) broadcast over rows.
    o_ref[...] = (alpha_ref[...] * x_ref[...] + beta_ref[...]).astype(o_ref.dtype)


def _scale_kernel(x_ref, alpha_ref, o_ref):
    o_ref[...] = (alpha_ref[...] * x_ref[...]).astype(o_ref.dtype)


def _round_up(a, b):
    return ((a + b - 1) // b) * b


def _tpu_generation():
    try:
        kind = jax.devices()[0].device_kind.lower()
    except Exception:
        return 0
    if "v7" in kind or "7x" in kind:
        return 7
    for g in (6, 5, 4):
        if f"v{g}" in kind:
            return g
    return 0


# gen -> (per-buffer block budget, scoped-VMEM default, max VMEM we request)
_GEN_TUNING = {
    7: (7 * _MIB, 32 * _MIB, 48 * _MIB),   # 3.2 TB/s HBM: big blocks pay off
    6: (6 * _MIB, 32 * _MIB, 100 * _MIB),
    5: (2 * _MIB, 16 * _MIB, 16 * _MIB),   # VMEM, not overhead, is the risk
}
_DEFAULT_TUNING = (2 * _MIB, 16 * _MIB, 16 * _MIB)


def _affine_2d(x2d, alpha_row, beta_row, out_dtype, target_block_bytes=None):
    """Run y = alpha*x (+ beta) over a 2-D (rows, L) view with row tiling."""
    r2, L = x2d.shape
    gen = _tpu_generation()
    block_budget, scoped_default, vmem_cap = _GEN_TUNING.get(gen, _DEFAULT_TUNING)
    if target_block_bytes is not None:
        block_budget = target_block_bytes

    x_item = jnp.dtype(x2d.dtype).itemsize
    out_item = jnp.dtype(out_dtype).itemsize
    param_item = jnp.dtype(alpha_row.dtype).itemsize
    n_params = 1 if beta_row is None else 2

    # Sublane pack for the activation dtype (8 f32, 16 bf16, 32 int8/fp8).
    pack = max(8, 32 // max(x_item, 1))
    # Size the row tile on the *larger* of in/out dtypes so the bf16-in /
    # f32-out case stays within the per-buffer byte budget on the output side.
    row_bytes = L * max(x_item, out_item)

    # Largest row tile within the per-buffer budget (no fixed row cap), a
    # multiple of the sublane pack.
    tile_rows = max(pack, (max(pack, block_budget // row_bytes) // pack) * pack)

    # Keep enough grid steps to (a) shard across both v7x TensorCores and
    # (b) overlap writeback(i) with fetch(i+1) within each core.
    min_steps = 4 if gen >= 7 else 2
    if pl.cdiv(r2, tile_rows) < min_steps:
        if r2 >= min_steps * pack:
            tile_rows = _round_up(pl.cdiv(r2, min_steps), pack)
        elif r2 >= 2 * pack:
            tile_rows = _round_up(pl.cdiv(r2, 2), pack)
        else:
            tile_rows = r2  # single block == full sublane extent (always legal)

    grid = (pl.cdiv(r2, tile_rows),)

    # ---- Explicit VMEM budget: nbuf*(in_block + out_block) + params.
    in_block = tile_rows * L * x_item
    out_block = tile_rows * L * out_item
    param_block = n_params * 8 * _round_up(L, 128) * param_item  # padded (8,128)

    nbuf = 2
    pipeline_kwargs = {}
    if gen >= 7 and hasattr(pl, "Buffered"):
        # 3-deep pipelining smooths DMA issue gaps on v7x when VMEM allows.
        if 3 * (in_block + out_block) + param_block + 6 * _MIB <= vmem_cap:
            nbuf = 3
            pipeline_kwargs = {"pipeline_mode": pl.Buffered(3)}

    needed = nbuf * (in_block + out_block) + param_block + 2 * _MIB
    vmem_limit = min(vmem_cap,
                     max(scoped_default, _round_up(needed + 4 * _MIB, _MIB)))

    def _spec(shape, index_map, use_pipe):
        if use_pipe and pipeline_kwargs:
            try:
                return pl.BlockSpec(shape, index_map, **pipeline_kwargs)
            except TypeError:  # older API without pipeline_mode
                return pl.BlockSpec(shape, index_map)
        return pl.BlockSpec(shape, index_map)

    x_spec = _spec((tile_rows, L), lambda i: (i, 0), True)
    out_spec = _spec((tile_rows, L), lambda i: (i, 0), True)
    # Constant index_map: Pallas keeps the (1, L) param block resident across
    # grid steps (no per-step re-DMA of alpha/beta).
    param_spec = pl.BlockSpec((1, L), lambda i: (0, 0))

    if beta_row is not None:
        kernel, inputs = _affine_kernel, (x2d, alpha_row, beta_row)
    else:
        kernel, inputs = _scale_kernel, (x2d, alpha_row)
    in_specs = [x_spec] + [param_spec] * n_params

    total = r2 * L
    cost = pl.CostEstimate(
        flops=2 * total,
        transcendentals=0,
        bytes_accessed=total * (x_item + out_item) + n_params * L * param_item,
    )

    return pl.pallas_call(
        kernel,
        out_shape=jax.ShapeDtypeStruct((r2, L), out_dtype),
        grid=grid,
        in_specs=in_specs,
        out_specs=out_spec,
        compiler_params=pltpu.CompilerParams(
            dimension_semantics=("parallel",),
            vmem_limit_bytes=vmem_limit),
        cost_estimate=cost,
    )(*inputs)


def affine_transform(x, alpha, beta=None, *, target_block_bytes=None):
    """Pallas implementation of AffineTransform.forward.

    x:     (..., dim)
    alpha: (dim,)
    beta:  (dim,) or None
    """
    orig_shape = x.shape
    dim = orig_shape[-1]
    assert alpha.shape == (dim,)

    if beta is not None:
        out_dtype = jnp.result_type(x.dtype, alpha.dtype, beta.dtype)
    else:
        out_dtype = jnp.result_type(x.dtype, alpha.dtype)

    total = math.prod(orig_shape)
    rows = total // dim
    x2d = x.reshape(rows, dim)

    def _run_packed(x_rows, reps):
        # Lane-dense view: last dim L = dim * reps is a multiple of 128.
        L = dim * reps
        xr = x_rows.reshape(x_rows.shape[0] // reps, L)
        a = jnp.tile(alpha, reps).reshape(1, L)
        b = None if beta is None else jnp.tile(beta, reps).reshape(1, L)
        out = _affine_2d(xr, a, b, out_dtype, target_block_bytes)
        return out.reshape(x_rows.shape[0], dim)

    def _run_plain(x_rows):
        a = alpha.reshape(1, dim)
        b = None if beta is None else beta.reshape(1, dim)
        return _affine_2d(x_rows, a, b, out_dtype, target_block_bytes)

    if dim % 128 == 0:
        out2d = _run_plain(x2d)  # already lane-dense
    else:
        lcm = math.lcm(dim, 128)
        reps = lcm // dim
        if lcm <= _LCM_CAP and rows % reps == 0:
            out2d = _run_packed(x2d, reps)
        elif lcm <= _LCM_CAP and rows >= reps and _round_up(dim, 128) > 2 * dim:
            # Lane padding would more than double DMA/store work on the masked
            # path, so pack the largest row prefix (multiple of reps) and
            # handle the tiny row remainder (< reps rows) with plain fused
            # XLA, preserving the original (rows, dim) alpha/beta alignment.
            r_main = (rows // reps) * reps
            out_main = _run_packed(x2d[:r_main], reps)
            rem = x2d[r_main:]
            out_rem = (alpha * rem + beta) if beta is not None else alpha * rem
            out2d = jnp.concatenate([out_main, out_rem.astype(out_dtype)], axis=0)
        else:
            # Mild padding (or unpackable width): a single masked-lane kernel
            # moves less HBM traffic than any split + concatenate alternative.
            out2d = _run_plain(x2d)

    return out2d.reshape(orig_shape)


if __name__ == "__main__":
    # Module config: AffineTransform(dim=32, alpha=1.0, beta=0.0)
    dim = 32
    key = jax.random.PRNGKey(0)
    k_x, k_a, k_b, k_x2, k_x3, k_x4 = jax.random.split(key, 6)

    # Deterministic params (perturbed so the test is non-trivial).
    alpha = 1.0 * jnp.ones((dim,), jnp.float32) + 0.1 * jax.random.normal(
        k_a, (dim,), dtype=jnp.float32)
    beta = 0.0 * jnp.ones((dim,), jnp.float32) + 0.1 * jax.random.normal(
        k_b, (dim,), dtype=jnp.float32)

    # Input: (batch=2, seq=8, dim=32) -- the module's typical (B, N, D) layout.
    x = jax.random.normal(k_x, (2, 8, dim), dtype=jnp.float32)

    # Pre-normalization Aff (alpha * x + beta).
    y = jax.block_until_ready(affine_transform(x, alpha, beta))
    y_ref = alpha * x + beta
    assert y.shape == x.shape
    assert jnp.allclose(y, y_ref, atol=1e-6, rtol=1e-6)

    # Post-normalization Aff (beta=None -> alpha * x).
    y2 = jax.block_until_ready(affine_transform(x, alpha, None))
    assert jnp.allclose(y2, alpha * x, atol=1e-6, rtol=1e-6)

    # Exercise the cdiv / partial-last-block path plus a channel dim >= 128
    # that is not a multiple of 128 (lane-packed to 640), with a small block
    # budget so the grid has several steps.
    dim2 = 160
    alpha2 = 1.0 + 0.1 * jax.random.normal(k_a, (dim2,), dtype=jnp.float32)
    beta2 = 0.1 * jax.random.normal(k_b, (dim2,), dtype=jnp.float32)
    x2 = jax.random.normal(k_x2, (4, 100, dim2), dtype=jnp.float32)
    y3 = jax.block_until_ready(
        affine_transform(x2, alpha2, beta2, target_block_bytes=64 * 1024))
    assert jnp.allclose(y3, alpha2 * x2 + beta2, atol=1e-6, rtol=1e-6)

    # bf16 activations with f32 params (promotes to f32, like the torch op).
    xb = jax.random.normal(k_x3, (2, 16, dim), dtype=jnp.bfloat16)
    y4 = jax.block_until_ready(affine_transform(xb, alpha, beta))
    assert y4.dtype == jnp.float32
    assert jnp.allclose(y4, alpha * xb + beta, atol=1e-5, rtol=1e-5)

    # Exercise the prefix-split fallback: dim=8 (reps=16), rows=18 not a
    # multiple of 16 -> packed prefix of 16 rows + 2-row XLA remainder.
    dim3 = 8
    alpha3 = 1.0 + 0.1 * jax.random.normal(k_a, (dim3,), dtype=jnp.float32)
    beta3 = 0.1 * jax.random.normal(k_b, (dim3,), dtype=jnp.float32)
    x4 = jax.random.normal(k_x4, (2, 9, dim3), dtype=jnp.float32)
    y5 = jax.block_until_ready(affine_transform(x4, alpha3, beta3))
    assert y5.shape == x4.shape
    assert jnp.allclose(y5, alpha3 * x4 + beta3, atol=1e-6, rtol=1e-6)

    print("KERNEL_OK")
</pallas_src>

<mosaic_0001>
module attributes {stable_mosaic.version = 11 : i64} {
  func.func @_affine_kernel(%arg0: i32, %arg1: memref<4x128xf32, #tpu.memory_space<vmem>>, %arg2: memref<1x128xf32, #tpu.memory_space<vmem>>, %arg3: memref<1x128xf32, #tpu.memory_space<vmem>>, %arg4: memref<4x128xf32, #tpu.memory_space<vmem>>) attributes {dimension_semantics = [#tpu.dimension_semantics<parallel>], iteration_bounds = array<i64: 1>, scalar_prefetch = 0 : i64, scratch_operands = 0 : i64, tpu.core_type = #tpu.core_type<tc>, window_params = [{transform_indices = @transform_0, window_bounds = array<i64: 4, 128>}, {pipeline_mode = #tpu.pipeline_mode<synchronous>, transform_indices = @transform_1, window_bounds = array<i64: 1, 128>}, {pipeline_mode = #tpu.pipeline_mode<synchronous>, transform_indices = @transform_2, window_bounds = array<i64: 1, 128>}, {transform_indices = @transform_3, window_bounds = array<i64: 4, 128>}]} {
    %c0 = arith.constant 0 : index
    %c0_0 = arith.constant 0 : index
    %0 = vector.load %arg2[%c0, %c0_0] : memref<1x128xf32, #tpu.memory_space<vmem>>, vector<1x128xf32>
    %c0_1 = arith.constant 0 : index
    %c0_2 = arith.constant 0 : index
    %1 = vector.load %arg1[%c0_1, %c0_2] : memref<4x128xf32, #tpu.memory_space<vmem>>, vector<4x128xf32>
    %2 = vector.broadcast %0 : vector<1x128xf32> to vector<4x128xf32>
    %3 = arith.mulf %2, %1 : vector<4x128xf32>
    %c0_3 = arith.constant 0 : index
    %c0_4 = arith.constant 0 : index
    %4 = vector.load %arg3[%c0_3, %c0_4] : memref<1x128xf32, #tpu.memory_space<vmem>>, vector<1x128xf32>
    %5 = vector.broadcast %4 : vector<1x128xf32> to vector<4x128xf32>
    %6 = arith.addf %3, %5 : vector<4x128xf32>
    %c0_5 = arith.constant 0 : index
    %c0_6 = arith.constant 0 : index
    %7 = vector.load %arg4[%c0_5, %c0_6] : memref<4x128xf32, #tpu.memory_space<vmem>>, vector<4x128xf32>
    tpu.vector_store %arg4[%c0_5, %c0_6], %6 {strides = array<i32>} : memref<4x128xf32, #tpu.memory_space<vmem>>, vector<4x128xf32>,
    return
  }
  func.func @transform_0(%arg0: i32) -> (i32, i32) {
    %c0_i32 = arith.constant 0 : i32
    %c0_i32_0 = arith.constant 0 : i32
    return %arg0, %c0_i32 : i32, i32
  }
  func.func @transform_1(%arg0: i32) -> (i32, i32) {
    %c0_i32 = arith.constant 0 : i32
    %c0_i32_0 = arith.constant 0 : i32
    %c0_i32_1 = arith.constant 0 : i32
    return %c0_i32, %c0_i32_0 : i32, i32
  }
  func.func @transform_2(%arg0: i32) -> (i32, i32) {
    %c0_i32 = arith.constant 0 : i32
    %c0_i32_0 = arith.constant 0 : i32
    %c0_i32_1 = arith.constant 0 : i32
    return %c0_i32, %c0_i32_0 : i32, i32
  }
  func.func @transform_3(%arg0: i32) -> (i32, i32) {
    %c0_i32 = arith.constant 0 : i32
    %c0_i32_0 = arith.constant 0 : i32
    return %arg0, %c0_i32 : i32, i32
  }
}

</mosaic_0001>

<bundles_post_ra>
// kernel: tpu_custom_call.1
= control target key start
LH: loop header
LB: loop body
LE: loop exit
PB: predicated region body
PF: predicated region fallthrough
CT: control target
= control target key end

     0   :  { %8 = vsyncpa [#allocation3], 0  ;;  %s164_s0 = inlined_call_operand.hbm [shape: f32[4,128], index: 0, kind: input, shape index: {}]   ;;  %s165_s1 = inlined_call_operand.vmem [shape: f32[1,128], index: 1, kind: input, shape index: {}]   ;;  %s166_s2 = inlined_call_operand.vmem [shape: f32[1,128], index: 2, kind: input, shape index: {}]   ;;  %s167_s3 = inlined_call_operand.hbm [shape: f32[4,128], index: 3, kind: output, shape index: {}]  }
   0x1   :  { %9 = vsyncpa [#allocation4], 0  ;;  %s112_s12 = smov [#allocation2]   ;;  %s64_s16 = scalar_lea.hbm %s164_s0, 64 }
   0x2   :  { %s16_s13 = sshll.u32 %s112_s12, 4  ;;  %p65_p0 = scmp.ne.s32.totalorder %s164_s0, %s64_s16  ;;  %s17_s13 = int_to_ptr.vmem [resolvable:$true] %s16_s13 }
   0x3   :  { %p68_p1 = scmp.lt.u32.totalorder %s64_s16, %s164_s0 }
   0x5   :  { %p70_p2 = pnand %p68_p1, %p65_p0 }
   0x7   :  { %73 = shalt.err (!%p70_p2)
}
   0x8   :  { %s74_s21 = scalar_lea.vmem %s17_s13, 64  ;;  %p79_p4 = scmp.lt.s32.totalorder %s17_s13, %s17_s13 }
   0x9   :  { %p75_p3 = scmp.ne.s32.totalorder %s17_s13, %s74_s21  ;;  %p80_p5 = scmp.lt.s32.totalorder %s74_s21, %s74_s21 }
   0xb   :  { %p81_p6 = por %p80_p5, %p79_p4 }
   0xd   :  { %p82_p7 = pnand %p81_p6, %p75_p3 }
   0xf   :  { %85 = shalt.err (!%p82_p7)
}
  0x10   :  { %19 = dma.hbm_to_vmem [thread:$0]  %s164_s0, 64, %s17_s13, [#allocation3]  }
  0x11   :  { %108 = dma.done.wait [#allocation3], 64  }
  0x12   :  { %109 = vsyncadd [#allocation3], 4294967232  ;;  %s113_s24 = smov [#allocation5]   ;;  %v60_v0 = vld [vmem:[%s165_s1] ss:$0 sm:$0xff] }
  0x13   :  { %s51_s25 = sshll.u32 %s113_s24, 4  ;;  %v28_v1 = vld [vmem:[#allocation2] sm:$0xf]  ;;  %s52_s25 = int_to_ptr.vmem [resolvable:$true] %s51_s25 }
  0x14   :  { %v61_v2 = vld [vmem:[%s166_s2] ss:$0 sm:$0xff]  ;;  %v35_v3 = vmul.f32 %v60_v0, %v28_v1  ;;  %s86_s30 = scalar_lea.vmem %s52_s25, 64  ;;  %p91_p9 = scmp.lt.s32.totalorder %s52_s25, %s52_s25 }
  0x15   :  { %p87_p8 = scmp.ne.s32.totalorder %s52_s25, %s86_s30  ;;  %p92_p10 = scmp.lt.s32.totalorder %s86_s30, %s86_s30 }
  0x16   :  { %v43_v4 = vadd.f32 %v61_v2, %v35_v3 }
  0x17   :  { %p93_p11 = por %p92_p10, %p91_p9 }
  0x18   :  { %44 = vst [vmem:[#allocation5] sm:$0xf] %v43_v4 }
  0x19   :  { %p94_p12 = pnand %p93_p11, %p87_p8 }
  0x1b   :  { %97 = shalt.err (!%p94_p12)
}
  0x1c   :  { %s98_s1 = scalar_lea.hbm %s167_s3, 64 }
  0x1d   :  { %p99_p13 = scmp.ne.s32.totalorder %s167_s3, %s98_s1  ;;  %p102_p0 = scmp.lt.u32.totalorder %s98_s1, %s167_s3 }
  0x1f   :  { %p104_p1 = pnand %p102_p0, %p99_p13 }
  0x21   :  { %107 = shalt.err (!%p104_p1)
}
  0x22   :  { %54 = dma.vmem_to_hbm [thread:$0]  %s52_s25, 64, %s167_s3, [#allocation4]  }
  0x23   :  { %110 = dma.done.wait [#allocation4], 64  }
  0x24   :  { %111 = vsyncadd [#allocation4], 4294967232 }
  0x25   :  { %58 = vsyncpa [#allocation3], 1 }
  0x26   :  { %59 = vsyncpa [#allocation4], 1 }

</bundles_post_ra>
